<compile_context>
chip_gen: v7x
topology: tpu7x:2x2x1
jax: 0.10.0
libtpu: 0.0.40
codegen_flags: <defaults>
</compile_context>

<pallas_src>
import numpy as np
import jax
import jax.numpy as jnp
from jax.experimental import pallas as pl
from jax.experimental.pallas import tpu as pltpu


# ----------------------------- Pallas kernel -------------------------------

def lstm_model_kernel(x_ref, w0_ref, wih_ref, pk_ref, out_ref):
    """Fused Linear -> num_layers x LSTMCell(step) -> LayerNorm -> ReLU -> fc.

    NOTE: the recurrent matmul (h0 @ W_hh), the f-gate and the f*c0 term are
    elided. This is exact ONLY because seq_len == 1 and h0 == c0 == 0; do not
    reuse this kernel for longer sequences or nonzero initial state.
    """
    x = x_ref[...]                                    # (bm, D_in)
    w0 = w0_ref[...]                                  # (D_in, 3H), Linear folded in
    pk = pk_ref[...]                                  # (L+2, 3H) packed smalls

    H3 = w0.shape[1]
    H = H3 // 3
    L = wih_ref.shape[0] + 1                          # num LSTM layers

    def cell(h_in, w, b):
        # gates = h_in @ w + b, columns [i | g | o]; the g columns of (w, b)
        # are pre-scaled by 2 so a single sigmoid launch covers all gates
        # (tanh(x) = 2*sigmoid(2x) - 1).
        gates = jnp.dot(h_in, w, preferred_element_type=jnp.float32) + b
        sig = jax.nn.sigmoid(gates)                   # one full-vreg EUP launch
        i_g = sig[:, 0 * H:1 * H]
        g_g = 2.0 * sig[:, 1 * H:2 * H] - 1.0         # == tanh(pre-activation)
        o_g = sig[:, 2 * H:3 * H]
        c = i_g * g_g                                 # f * c0 == 0
        return o_g * jnp.tanh(c)

    # Layer 0: input Linear algebraically folded into its gate matmul.
    h = cell(x, w0, pk[0:1, :])
    # Layers 1..L-1 (index the weight ref per layer -> fewer live vregs).
    for l in range(1, L):                             # static unroll, small L
        h = cell(h, wih_ref[l - 1], pk[l:l + 1, :])
    # TODO(synk): inter-layer LSTM dropout is a no-op in eval mode.

    # LayerNorm (eps = 1e-5, biased variance, elementwise affine).
    gamma = pk[L:L + 1, 0 * H:1 * H]                  # (1, H)
    beta = pk[L:L + 1, 1 * H:2 * H]                   # (1, H)
    inv_h = 1.0 / H
    s1 = jnp.sum(h, axis=-1, keepdims=True)           # two independent
    s2 = jnp.sum(h * h, axis=-1, keepdims=True)       # lane reductions
    mu = s1 * inv_h
    var = jnp.maximum(s2 * inv_h - mu * mu, 0.0)      # clamp: no NaN from rounding
    normed = (h - mu) * jax.lax.rsqrt(var + 1e-5) * gamma + beta

    # Dropout: identity at inference.  Activation: ReLU.
    act = jnp.maximum(normed, 0.0)

    # Final fc (H -> 1): VPU multiply + lane reduce (no padded MXU matmul).
    wfc_row = pk[L:L + 1, 2 * H:3 * H]                # (1, H)
    bfc = pk[L + 1:L + 2, 0:1]                        # (1, 1)
    out_ref[...] = jnp.sum(act * wfc_row, axis=-1, keepdims=True) + bfc


# ------------------------------- Packing ------------------------------------

def pack_params(params):
    """One-time constant folding of weights (exact algebraic rewrites).

    * Input Linear folded into layer-0's gate projection.
    * Dead f-gate pruned; gate order becomes [i, g, o] (3H columns).
    * g-gate weight/bias columns pre-scaled by 2 (tanh(x) = 2*sigmoid(2x)-1).
    * b_ih + b_hh fused; all small vectors packed into one (L+2, 3H) buffer:
        rows 0..L-1 : per-layer gate bias (row 0 includes the folded Linear)
        row  L      : [ gamma(H) | beta(H) | wfc_row(H) ]
        row  L+1    : [ bfc, 0, ... ]
    """
    (wlin, blin, wih, bih, whh, bhh, gamma, beta, wfc, bfc) = params
    L, H4 = bih.shape
    H = H4 // 4
    f32 = jnp.float32

    def prune_scale_w(w):   # (in, 4H) -> (in, 3H): drop f cols, scale g by 2
        return jnp.concatenate(
            [w[:, 0:H], 2.0 * w[:, 2 * H:3 * H], w[:, 3 * H:4 * H]], axis=1)

    def prune_scale_b(b):   # (4H,) -> (3H,)
        return jnp.concatenate(
            [b[0:H], 2.0 * b[2 * H:3 * H], b[3 * H:4 * H]], axis=0)

    fused_b = (bih + bhh).astype(f32)                                  # (L, 4H)

    # Layer 0: fold Linear(input_size -> H) into the gate matmul.
    w0_full = wlin.astype(f32) @ wih[0].astype(f32)                    # (D_in, 4H)
    b0_full = (blin.reshape(1, H).astype(f32) @ wih[0].astype(f32)
               + fused_b[0:1])                                         # (1, 4H)
    w0 = prune_scale_w(w0_full)                                        # (D_in, 3H)

    bias_rows = [prune_scale_b(b0_full[0])]
    w_rest = []
    for l in range(1, L):
        w_rest.append(prune_scale_w(wih[l].astype(f32)))
        bias_rows.append(prune_scale_b(fused_b[l]))
    wih_rest = jnp.stack(w_rest, axis=0)                               # (L-1, H, 3H)

    row_small = jnp.concatenate(
        [gamma.reshape(1, H), beta.reshape(1, H), wfc.reshape(1, H)],
        axis=1).astype(f32)                                            # (1, 3H)
    bfc_row = jnp.zeros((1, 3 * H), f32).at[0, 0].set(
        bfc.reshape(()).astype(f32))                                   # (1, 3H)

    packed = jnp.concatenate(
        [jnp.stack(bias_rows, axis=0), row_small, bfc_row], axis=0)    # (L+2, 3H)
    return w0, wih_rest, packed


# ------------------------------- Wrapper ------------------------------------

def lstm_model_forward(x, w0, wih_rest, packed, *, block_b=None):
    B, D_in = x.shape
    H3 = w0.shape[1]
    H = H3 // 3
    L = wih_rest.shape[0] + 1

    # Batch tile: single block for small B; for large B tile the batch so the
    # grid (marked "parallel") can shard across the two TensorCores on v7x.
    if block_b is None:
        block_b = B
        if B > 128:
            for cand in (256, 128):
                if B % cand == 0 and B // cand >= 2:
                    block_b = cand
                    break
    grid = (B // block_b,)

    def full_spec(a):
        nd = a.ndim
        return pl.BlockSpec(a.shape, lambda i, _nd=nd: (0,) * _nd)

    flops = (2 * B * D_in * H3 + (L - 1) * 2 * B * H * H3 + 2 * B * H)
    transcendentals = L * B * (H3 + H) + B
    bytes_accessed = 4 * (x.size + w0.size + wih_rest.size + packed.size + B)

    return pl.pallas_call(
        lstm_model_kernel,
        out_shape=jax.ShapeDtypeStruct((B, 1), jnp.float32),
        grid=grid,
        in_specs=[
            pl.BlockSpec((block_b, D_in), lambda i: (i, 0)),
            full_spec(w0),
            full_spec(wih_rest),
            full_spec(packed),
        ],
        out_specs=pl.BlockSpec((block_b, 1), lambda i: (i, 0)),
        compiler_params=pltpu.CompilerParams(
            dimension_semantics=("parallel",)),
        cost_estimate=pl.CostEstimate(
            flops=flops, transcendentals=transcendentals,
            bytes_accessed=bytes_accessed),
    )(x, w0, wih_rest, packed)


lstm_model_forward_jit = jax.jit(lstm_model_forward, static_argnames=("block_b",))


# ---------------------- Pure-JAX reference (for checking) -------------------

def lstm_model_ref(x, params):
    (wlin, blin, wih, bih, whh, bhh, gamma, beta, wfc, bfc) = params
    h = x @ wlin + blin
    B, H = h.shape
    L = wih.shape[0]
    zero = jnp.zeros((B, H), jnp.float32)
    for l in range(L):
        gates = h @ wih[l] + zero @ whh[l] + bih[l] + bhh[l]
        i = jax.nn.sigmoid(gates[:, 0 * H:1 * H])
        f = jax.nn.sigmoid(gates[:, 1 * H:2 * H])
        g = jnp.tanh(gates[:, 2 * H:3 * H])
        o = jax.nn.sigmoid(gates[:, 3 * H:4 * H])
        c = f * zero + i * g
        h = o * jnp.tanh(c)
    mu = jnp.mean(h, axis=-1, keepdims=True)
    var = jnp.mean((h - mu) ** 2, axis=-1, keepdims=True)
    h = (h - mu) / jnp.sqrt(var + 1e-5) * gamma + beta
    h = jnp.maximum(h, 0.0)
    return h @ wfc + bfc


# --------------------------------- Main --------------------------------------

if __name__ == "__main__":
    # Small, deterministic config
    B = 8
    input_size = 16
    hidden_size = 32
    num_layers = 2
    # dropout=0.1 (identity at inference), activation='relu'

    key = jax.random.PRNGKey(0)
    keys = jax.random.split(key, 12)

    def init(k, shape, scale=0.1):
        return (scale * jax.random.normal(k, shape)).astype(jnp.float32)

    # Linear(input_size -> hidden): stored transposed as (D_in, H)
    wlin = init(keys[1], (input_size, hidden_size))
    blin = init(keys[2], (1, hidden_size))

    # LSTM weights, stacked over layers, pre-transposed to (L, H, 4H) / (L, 4H).
    # Gate order matches PyTorch: [i, f, g, o].
    wih = init(keys[3], (num_layers, hidden_size, 4 * hidden_size))
    bih = init(keys[4], (num_layers, 4 * hidden_size))
    whh = init(keys[5], (num_layers, hidden_size, 4 * hidden_size))
    bhh = init(keys[6], (num_layers, 4 * hidden_size))

    # LayerNorm affine params
    gamma = jnp.ones((1, hidden_size), jnp.float32) + init(keys[7], (1, hidden_size))
    beta = init(keys[8], (1, hidden_size))

    # Final fc(hidden -> 1): W stored transposed as (H, 1)
    wfc = init(keys[9], (hidden_size, 1))
    bfc = init(keys[10], (1, 1))

    params = (wlin, blin, wih, bih, whh, bhh, gamma, beta, wfc, bfc)

    # One-time constant fold / packing (Linear fold, f-gate prune, g-scale).
    w0_p, wih_p, packed = pack_params(params)

    # Tolerances: the rewrites are exact algebraically but reassociate f32 math
    # (folded matmul, E[x^2]-mu^2 variance, tanh-via-sigmoid).
    rtol, atol = 1e-4, 1e-4

    # --- Small batch (single block, no grid parallelism needed) ---
    x_small = init(keys[0], (B, input_size), scale=1.0)
    out = jax.block_until_ready(lstm_model_forward_jit(x_small, w0_p, wih_p, packed))
    ref = jax.block_until_ready(lstm_model_ref(x_small, params))
    assert out.shape == (B, 1), out.shape
    np.testing.assert_allclose(np.asarray(out), np.asarray(ref), rtol=rtol, atol=atol)

    # --- Larger batch: exercises the batch grid ("parallel" -> v7x megacore) ---
    B_big = 256
    x_big = init(keys[11], (B_big, input_size), scale=1.0)
    out_big = jax.block_until_ready(lstm_model_forward_jit(x_big, w0_p, wih_p, packed))
    ref_big = jax.block_until_ready(lstm_model_ref(x_big, params))
    assert out_big.shape == (B_big, 1), out_big.shape
    np.testing.assert_allclose(np.asarray(out_big), np.asarray(ref_big),
                               rtol=rtol, atol=atol)

    print("KERNEL_OK")
</pallas_src>

<mosaic_0001>
module attributes {stable_mosaic.version = 11 : i64} {
  func.func @lstm_model_kernel(%arg0: i32, %arg1: memref<8x16xf32, #tpu.memory_space<vmem>>, %arg2: memref<16x96xf32, #tpu.memory_space<vmem>>, %arg3: memref<1x32x96xf32, #tpu.memory_space<vmem>>, %arg4: memref<4x96xf32, #tpu.memory_space<vmem>>, %arg5: memref<8x1xf32, #tpu.memory_space<vmem>>) attributes {dimension_semantics = [#tpu.dimension_semantics<parallel>], iteration_bounds = array<i64: 1>, scalar_prefetch = 0 : i64, scratch_operands = 0 : i64, tpu.core_type = #tpu.core_type<tc>, window_params = [{transform_indices = @transform_0, window_bounds = array<i64: 8, 16>}, {pipeline_mode = #tpu.pipeline_mode<synchronous>, transform_indices = @transform_1, window_bounds = array<i64: 16, 96>}, {pipeline_mode = #tpu.pipeline_mode<synchronous>, transform_indices = @transform_2, window_bounds = array<i64: 1, 32, 96>}, {pipeline_mode = #tpu.pipeline_mode<synchronous>, transform_indices = @transform_3, window_bounds = array<i64: 4, 96>}, {transform_indices = @transform_4, window_bounds = array<i64: 8, 1>}]} {
    %c0 = arith.constant 0 : index
    %c0_0 = arith.constant 0 : index
    %0 = vector.load %arg1[%c0, %c0_0] : memref<8x16xf32, #tpu.memory_space<vmem>>, vector<8x16xf32>
    %c0_1 = arith.constant 0 : index
    %c0_2 = arith.constant 0 : index
    %1 = vector.load %arg2[%c0_1, %c0_2] : memref<16x96xf32, #tpu.memory_space<vmem>>, vector<16x96xf32>
    %c0_3 = arith.constant 0 : index
    %c0_4 = arith.constant 0 : index
    %2 = vector.load %arg4[%c0_3, %c0_4] : memref<4x96xf32, #tpu.memory_space<vmem>>, vector<4x96xf32>
    %3 = vector.extract_strided_slice %2 {offsets = [0, 0], sizes = [1, 96], strides = [1, 1]} : vector<4x96xf32> to vector<1x96xf32>
    %cst = arith.constant dense<0.000000e+00> : vector<8x96xf32>
    %4 = tpu.matmul %0, %1, %cst {dimension_numbers = #tpu.dot_dimension_numbers<[1], [0], [0], [1], [0, 0, 1, 1], [], []>} : vector<8x16xf32>, vector<16x96xf32>, vector<8x96xf32> -> vector<8x96xf32>
    %5 = vector.broadcast %3 : vector<1x96xf32> to vector<8x96xf32>
    %6 = arith.addf %4, %5 : vector<8x96xf32>
    %7 = arith.negf %6 : vector<8x96xf32>
    %8 = math.exp %7 : vector<8x96xf32>
    %cst_5 = arith.constant 1.000000e+00 : f32
    %9 = vector.broadcast %cst_5 : f32 to vector<8x96xf32>
    %10 = arith.addf %9, %8 : vector<8x96xf32>
    %11 = arith.divf %9, %10 : vector<8x96xf32>
    %12 = vector.extract_strided_slice %11 {offsets = [0, 0], sizes = [8, 32], strides = [1, 1]} : vector<8x96xf32> to vector<8x32xf32>
    %13 = vector.extract_strided_slice %11 {offsets = [0, 32], sizes = [8, 32], strides = [1, 1]} : vector<8x96xf32> to vector<8x32xf32>
    %cst_6 = arith.constant 2.000000e+00 : f32
    %14 = vector.broadcast %cst_6 : f32 to vector<8x32xf32>
    %15 = arith.mulf %14, %13 : vector<8x32xf32>
    %cst_7 = arith.constant 1.000000e+00 : f32
    %16 = vector.broadcast %cst_7 : f32 to vector<8x32xf32>
    %17 = arith.subf %15, %16 : vector<8x32xf32>
    %18 = vector.extract_strided_slice %11 {offsets = [0, 64], sizes = [8, 32], strides = [1, 1]} : vector<8x96xf32> to vector<8x32xf32>
    %19 = arith.mulf %12, %17 : vector<8x32xf32>
    %20 = math.tanh %19 : vector<8x32xf32>
    %21 = arith.mulf %18, %20 : vector<8x32xf32>
    %c0_8 = arith.constant 0 : index
    %c0_9 = arith.constant 0 : index
    %c0_10 = arith.constant 0 : index
    %22 = vector.load %arg3[%c0_8, %c0_9, %c0_10] : memref<1x32x96xf32, #tpu.memory_space<vmem>>, vector<1x32x96xf32>
    %23 = vector.shape_cast %22 : vector<1x32x96xf32> to vector<32x96xf32>
    %24 = vector.extract_strided_slice %2 {offsets = [1, 0], sizes = [1, 96], strides = [1, 1]} : vector<4x96xf32> to vector<1x96xf32>
    %cst_11 = arith.constant dense<0.000000e+00> : vector<8x96xf32>
    %25 = tpu.matmul %21, %23, %cst_11 {dimension_numbers = #tpu.dot_dimension_numbers<[1], [0], [0], [1], [0, 0, 1, 1], [], []>} : vector<8x32xf32>, vector<32x96xf32>, vector<8x96xf32> -> vector<8x96xf32>
    %26 = vector.broadcast %24 : vector<1x96xf32> to vector<8x96xf32>
    %27 = arith.addf %25, %26 : vector<8x96xf32>
    %28 = arith.negf %27 : vector<8x96xf32>
    %29 = math.exp %28 : vector<8x96xf32>
    %cst_12 = arith.constant 1.000000e+00 : f32
    %30 = vector.broadcast %cst_12 : f32 to vector<8x96xf32>
    %31 = arith.addf %30, %29 : vector<8x96xf32>
    %32 = arith.divf %30, %31 : vector<8x96xf32>
    %33 = vector.extract_strided_slice %32 {offsets = [0, 0], sizes = [8, 32], strides = [1, 1]} : vector<8x96xf32> to vector<8x32xf32>
    %34 = vector.extract_strided_slice %32 {offsets = [0, 32], sizes = [8, 32], strides = [1, 1]} : vector<8x96xf32> to vector<8x32xf32>
    %cst_13 = arith.constant 2.000000e+00 : f32
    %35 = vector.broadcast %cst_13 : f32 to vector<8x32xf32>
    %36 = arith.mulf %35, %34 : vector<8x32xf32>
    %cst_14 = arith.constant 1.000000e+00 : f32
    %37 = vector.broadcast %cst_14 : f32 to vector<8x32xf32>
    %38 = arith.subf %36, %37 : vector<8x32xf32>
    %39 = vector.extract_strided_slice %32 {offsets = [0, 64], sizes = [8, 32], strides = [1, 1]} : vector<8x96xf32> to vector<8x32xf32>
    %40 = arith.mulf %33, %38 : vector<8x32xf32>
    %41 = math.tanh %40 : vector<8x32xf32>
    %42 = arith.mulf %39, %41 : vector<8x32xf32>
    %43 = vector.extract_strided_slice %2 {offsets = [2, 0], sizes = [1, 32], strides = [1, 1]} : vector<4x96xf32> to vector<1x32xf32>
    %44 = vector.extract_strided_slice %2 {offsets = [2, 32], sizes = [1, 32], strides = [1, 1]} : vector<4x96xf32> to vector<1x32xf32>
    %cst_15 = arith.constant dense<0.000000e+00> : vector<8xf32>
    %45 = vector.multi_reduction <add>, %42, %cst_15 [1] : vector<8x32xf32> to vector<8xf32>
    %46 = vector.shape_cast %45 : vector<8xf32> to vector<8x1xf32>
    %47 = arith.mulf %42, %42 : vector<8x32xf32>
    %cst_16 = arith.constant dense<0.000000e+00> : vector<8xf32>
    %48 = vector.multi_reduction <add>, %47, %cst_16 [1] : vector<8x32xf32> to vector<8xf32>
    %49 = vector.shape_cast %48 : vector<8xf32> to vector<8x1xf32>
    %cst_17 = arith.constant 3.125000e-02 : f32
    %50 = vector.broadcast %cst_17 : f32 to vector<8x1xf32>
    %51 = arith.mulf %46, %50 : vector<8x1xf32>
    %cst_18 = arith.constant 3.125000e-02 : f32
    %52 = vector.broadcast %cst_18 : f32 to vector<8x1xf32>
    %53 = arith.mulf %49, %52 : vector<8x1xf32>
    %54 = arith.mulf %51, %51 : vector<8x1xf32>
    %55 = arith.subf %53, %54 : vector<8x1xf32>
    %cst_19 = arith.constant 0.000000e+00 : f32
    %56 = vector.broadcast %cst_19 : f32 to vector<8x1xf32>
    %57 = arith.maximumf %55, %56 : vector<8x1xf32>
    %58 = vector.broadcast %51 : vector<8x1xf32> to vector<8x32xf32>
    %59 = arith.subf %42, %58 : vector<8x32xf32>
    %cst_20 = arith.constant 9.99999974E-6 : f32
    %60 = vector.broadcast %cst_20 : f32 to vector<8x1xf32>
    %61 = arith.addf %57, %60 : vector<8x1xf32>
    %62 = math.rsqrt %61 : vector<8x1xf32>
    %63 = vector.broadcast %62 : vector<8x1xf32> to vector<8x32xf32>
    %64 = arith.mulf %59, %63 : vector<8x32xf32>
    %65 = vector.broadcast %43 : vector<1x32xf32> to vector<8x32xf32>
    %66 = arith.mulf %64, %65 : vector<8x32xf32>
    %67 = vector.broadcast %44 : vector<1x32xf32> to vector<8x32xf32>
    %68 = arith.addf %66, %67 : vector<8x32xf32>
    %cst_21 = arith.constant 0.000000e+00 : f32
    %69 = vector.broadcast %cst_21 : f32 to vector<8x32xf32>
    %70 = arith.maximumf %68, %69 : vector<8x32xf32>
    %71 = vector.extract_strided_slice %2 {offsets = [2, 64], sizes = [1, 32], strides = [1, 1]} : vector<4x96xf32> to vector<1x32xf32>
    %72 = vector.extract_strided_slice %2 {offsets = [3, 0], sizes = [1, 1], strides = [1, 1]} : vector<4x96xf32> to vector<1x1xf32>
    %73 = vector.broadcast %71 : vector<1x32xf32> to vector<8x32xf32>
    %74 = arith.mulf %70, %73 : vector<8x32xf32>
    %cst_22 = arith.constant dense<0.000000e+00> : vector<8xf32>
    %75 = vector.multi_reduction <add>, %74, %cst_22 [1] : vector<8x32xf32> to vector<8xf32>
    %76 = vector.shape_cast %75 : vector<8xf32> to vector<8x1xf32>
    %77 = vector.broadcast %72 : vector<1x1xf32> to vector<8x1xf32>
    %78 = arith.addf %76, %77 : vector<8x1xf32>
    %c0_23 = arith.constant 0 : index
    %c0_24 = arith.constant 0 : index
    %79 = vector.load %arg5[%c0_23, %c0_24] : memref<8x1xf32, #tpu.memory_space<vmem>>, vector<8x1xf32>
    tpu.vector_store %arg5[%c0_23, %c0_24], %78 {strides = array<i32>} : memref<8x1xf32, #tpu.memory_space<vmem>>, vector<8x1xf32>,
    return
  }
  func.func @transform_0(%arg0: i32) -> (i32, i32) {
    %c0_i32 = arith.constant 0 : i32
    %c0_i32_0 = arith.constant 0 : i32
    return %arg0, %c0_i32 : i32, i32
  }
  func.func @transform_1(%arg0: i32) -> (i32, i32) {
    %c0_i32 = arith.constant 0 : i32
    %c0_i32_0 = arith.constant 0 : i32
    %c0_i32_1 = arith.constant 0 : i32
    return %c0_i32, %c0_i32_0 : i32, i32
  }
  func.func @transform_2(%arg0: i32) -> (i32, i32, i32) {
    %c0_i32 = arith.constant 0 : i32
    %c0_i32_0 = arith.constant 0 : i32
    %c0_i32_1 = arith.constant 0 : i32
    %c0_i32_2 = arith.constant 0 : i32
    return %c0_i32, %c0_i32_0, %c0_i32_1 : i32, i32, i32
  }
  func.func @transform_3(%arg0: i32) -> (i32, i32) {
    %c0_i32 = arith.constant 0 : i32
    %c0_i32_0 = arith.constant 0 : i32
    %c0_i32_1 = arith.constant 0 : i32
    return %c0_i32, %c0_i32_0 : i32, i32
  }
  func.func @transform_4(%arg0: i32) -> (i32, i32) {
    %c0_i32 = arith.constant 0 : i32
    %c0_i32_0 = arith.constant 0 : i32
    return %arg0, %c0_i32 : i32, i32
  }
}

</mosaic_0001>

<bundles_post_ra>
// kernel: lstm_model_forward.1
= control target key start
LH: loop header
LB: loop body
LE: loop exit
PB: predicated region body
PF: predicated region fallthrough
CT: control target
= control target key end

     0   :  { %9 = vsyncpa [#allocation3], 0  ;;  %s564_s0 = inlined_call_operand.hbm [shape: f32[8,16], index: 0, kind: input, shape index: {}]   ;;  %s565_s1 = inlined_call_operand.hbm [shape: f32[16,96], index: 1, kind: input, shape index: {}]   ;;  %s566_s2 = inlined_call_operand.hbm [shape: f32[1,32,96], index: 2, kind: input, shape index: {}]   ;;  %s567_s3 = inlined_call_operand.vmem [shape: f32[4,96], index: 3, kind: input, shape index: {}]   ;;  %s568_s4 = inlined_call_operand.vmem [shape: f32[8,1], index: 4, kind: output, shape index: {}]  }
   0x1   :  { %10 = vsyncpa [#allocation5], 0  ;;  %s455_s15 = smov [#allocation4]   ;;  %s385_s19 = scalar_lea.hbm %s565_s1, 256 }
   0x2   :  { %s26_s16 = sshll.u32 %s455_s15, 4  ;;  %p386_p0 = scmp.ne.s32.totalorder %s565_s1, %s385_s19  ;;  %s27_s16 = int_to_ptr.vmem [resolvable:$true] %s26_s16 }
   0x3   :  { %p389_p1 = scmp.lt.u32.totalorder %s385_s19, %s565_s1 }
   0x5   :  { %p391_p2 = pnand %p389_p1, %p386_p0 }
   0x7   :  { %394 = shalt.err (!%p391_p2)
}
   0x8   :  { %s395_s24 = scalar_lea.vmem %s27_s16, 256  ;;  %p400_p4 = scmp.lt.s32.totalorder %s27_s16, %s27_s16 }
   0x9   :  { %p396_p3 = scmp.ne.s32.totalorder %s27_s16, %s395_s24  ;;  %p401_p5 = scmp.lt.s32.totalorder %s395_s24, %s395_s24 }
   0xb   :  { %p402_p6 = por %p401_p5, %p400_p4 }
   0xd   :  { %p403_p7 = pnand %p402_p6, %p396_p3 }
   0xf   :  { %406 = shalt.err (!%p403_p7)
}
  0x10   :  { %s456_s25 = smov 128   ;;  %s457_s26 = smov 8  }
  0x11   :  { %32 = dma.hbm_to_vmem [thread:$0]  %s565_s1, 256, %s27_s16, [#allocation5], %s456_s25, %s456_s25, %s457_s26  }
  0x12   :  { %s458_s29 = smov [#allocation2]   ;;  %s459_s5 = smov [#allocation6]  }
  0x13   :  { %s17_s30 = sshll.u32 %s458_s29, 4  ;;  %s38_s6 = sshll.u32 %s459_s5, 4  ;;  %s18_s30 = int_to_ptr.vmem [resolvable:$true] %s17_s30  ;;  %s39_s6 = int_to_ptr.vmem [resolvable:$true] %s38_s6 }
  0x14   :  { %s407_s9 = scalar_lea.hbm %s564_s0, 128 }
  0x15   :  { %p408_p8 = scmp.ne.s32.totalorder %s564_s0, %s407_s9  ;;  %p411_p9 = scmp.lt.u32.totalorder %s407_s9, %s564_s0 }
  0x17   :  { %p413_p10 = pnand %p411_p9, %p408_p8 }
  0x19   :  { %416 = shalt.err (!%p413_p10)
}
  0x1a   :  { %s417_s1 = scalar_lea.vmem %s18_s30, 128  ;;  %p422_p12 = scmp.lt.s32.totalorder %s18_s30, %s18_s30 }
  0x1b   :  { %p418_p11 = scmp.ne.s32.totalorder %s18_s30, %s417_s1  ;;  %p423_p13 = scmp.lt.s32.totalorder %s417_s1, %s417_s1 }
  0x1d   :  { %p424_p0 = por %p423_p13, %p422_p12 }
  0x1f   :  { %p425_p1 = pnand %p424_p0, %p418_p11 }
  0x21   :  { %428 = shalt.err (!%p425_p1)
}
  0x22   :  { %20 = dma.hbm_to_vmem [thread:$0]  %s564_s0, 128, %s18_s30, [#allocation3]  }
  0x23   :  { %s429_s18 = scalar_lea.hbm %s566_s2, 512 }
  0x24   :  { %p430_p2 = scmp.ne.s32.totalorder %s566_s2, %s429_s18  ;;  %p433_p3 = scmp.lt.u32.totalorder %s429_s18, %s566_s2 }
  0x26   :  { %p435_p4 = pnand %p433_p3, %p430_p2 }
  0x28   :  { %438 = shalt.err (!%p435_p4)
}
  0x29   :  { %s439_s23 = scalar_lea.vmem %s39_s6, 512  ;;  %p444_p6 = scmp.lt.s32.totalorder %s39_s6, %s39_s6 }
  0x2a   :  { %p440_p5 = scmp.ne.s32.totalorder %s39_s6, %s439_s23  ;;  %p445_p7 = scmp.lt.s32.totalorder %s439_s23, %s439_s23 }
  0x2c   :  { %p446_p8 = por %p445_p7, %p444_p6 }
  0x2e   :  { %p447_p9 = pnand %p446_p8, %p440_p5 }
  0x30   :  { %450 = shalt.err (!%p447_p9)
}
  0x31   :  { %44 = dma.hbm_to_vmem [thread:$0]  %s566_s2, 512, %s39_s6, [#allocation5], %s456_s25, %s456_s25, %s457_s26  }
  0x32   :  { %451 = dma.done.wait [#allocation3], 128  }
  0x33   :  { %452 = vsyncadd [#allocation3], 4294967168 }
  0x34   :  { %453 = dma.done.wait [#allocation5], 768  }
  0x35   :  { %454 = vsyncadd [#allocation5], 4294966528  ;;  %v460_v0 = vmov 0.0|0.0   ;;  %vm461_vm0 = vmmov 0   ;;  %v462_v1 = vmov 0.0   ;;  %v57_v2 = vld [vmem:[#allocation4] sm:$0xff]  ;;  %v60_v6 = vlaneseq }
  0x36   :  { %351 = vmatprep.subr.bf16.mxu0 %v460_v0  ;;  %337 = vmatprep.mubr.msk.f32.mxu0 %vm461_vm0, %v462_v1  ;;  %v58_v3 = vld [vmem:[#allocation4 + $0x8] sm:$0xff]  ;;  %v56_v5 = vld [vmem:[#allocation2] sm:$0xff]  ;;  %vm64_vm1 = vcmask 130048   ;;  %v539_v9 = vld [vmem:[%s567_s3] sm:$0xf]  ;;  %s463_s26 = smov 96  }
  0x37   :  { %354 = vmatprep.subr.bf16.mxu1 %v460_v0  ;;  %348 = vmatprep.mubr.msk.f32.mxu1 %vm461_vm0, %v462_v1  ;;  %v352_v4 = vpack.c.bf16 %v58_v3, %v57_v2  ;;  %v533_v7 = vshrl.u32 %v60_v6, 7  ;;  %v157_v22 = vld [vmem:[#allocation6] sm:$0xff]  ;;  %v158_v23 = vld [vmem:[#allocation6 + $0x8] sm:$0xff]  ;;  %v159_v24 = vld [vmem:[#allocation6 + $0x10] sm:$0xff]  ;;  %s464_s3 = smov 64   ;;  %vm168_vm2 = vcmask 261120  }
  0x38   :  { %v355_v25 = vpack.c.bf16 %v158_v23, %v157_v22  ;;  %v160_v26 = vld [vmem:[#allocation6 + $0x18] sm:$0xff]  ;;  %s465_s27 = smov 32   ;;  %vm311_vm3 = vcmask 7168  }
  0x39   :  { %353 = vmatpush3.bf16.msra.mxu0 %v352_v4  ;;  %v62_v8 = vsub.s32 0, %v533_v7  ;;  %v358_v27 = vpack.c.bf16 %v160_v26, %v159_v24  ;;  %v163_v32 = vsub.s32 1, %v533_v7  ;;  %v286_v53 = vsub.s32 2, %v533_v7 }
  0x3a   :  { %356 = vmatpush3.bf16.msra.mxu1 %v355_v25 }
  0x3b   :  { %v63_v10 = vrot.slane %v539_v9, %v62_v8  ;;  %357 = vmatprep.subr.bf16.mxu1 %v460_v0  ;;  %v164_v33 = vrot.slane %v539_v9, %v163_v32  ;;  %v287_v54 = vrot.slane %v539_v9, %v286_v53 }
  0x3c   :  { %338 = vmatmul.mubr.msk.f32.vlgmr.msra.gmra.mrb[0].mxu0 %vm64_vm1, %v56_v5 }
  0x3e   :  { %359 = vmatpush3.bf16.msra.mxu1 %v358_v27 }
 0x10f   :  { %v134_v11 = vpop.f32.mrb[0].mxu0 }
 0x110   :  { %v135_v12 = vadd.f32 %v134_v11, %v63_v10  ;;  %v339_v13 = vpop.f32.mrb[1].mxu0 }
 0x112   :  { %v320_v14 = vmul.f32 -1.442695, %v135_v12  ;;  %v308_v12 = vsub.s32 3, %v533_v7 }
 0x114   :  { %371 = vpow2.f32 %v320_v14  ;;  %v309_v13 = vrot.slane %v539_v9, %v308_v12 }
 0x11e   :  { %v372_v15 = vpop.eup %371 }
 0x11f   :  { %v141_v16 = vadd.f32 1.0, %v372_v15 }
 0x121   :  { %373 = vrcp.f32 %v141_v16 }
 0x12b   :  { %v374_v17 = vpop.eup %373 }
 0x12c   :  { %v144_v18 = vmul.f32 2.0, %v374_v17 }
 0x12e   :  { %v321_v19 = vadd.f32 -1.0, %v144_v18 }
 0x130   :  { %147 = vrot.lane.b32.xlu0 %v321_v19, %s463_s26 }
 0x1a2   :  { %v148_v20 = vpop.permute.xlu0 %147 }
 0x1a3   :  { %v150_v21 = vmul.f32 %v374_v17, %v148_v20 }
 0x1a5   :  { %375 = vtanh.f32 %v150_v21 }
 0x1af   :  { %v376_v28 = vpop.eup %375 }
 0x1b0   :  { %153 = vrot.lane.b32.xlu0 %v376_v28, %s464_s3 }
 0x222   :  { %v154_v29 = vpop.permute.xlu0 %153 }
 0x223   :  { %v156_v30 = vmul.f32 %v374_v17, %v154_v29 }
 0x225   :  { %166 = vrot.lane.b32.xlu1 %v156_v30, %s464_s3 }
 0x297   :  { %v167_v31 = vpop.permute.xlu1 %166 }
 0x298   :  { %349 = vmatmul.mubr.msk.f32.vlgmr.msra.gmra.mrb[0].mxu1 %vm168_vm2, %v167_v31 }
 0x36b   :  { %v237_v34 = vpop.f32.mrb[0].mxu1 }
 0x36c   :  { %v238_v35 = vadd.f32 %v237_v34, %v164_v33  ;;  %v350_v36 = vpop.f32.mrb[1].mxu1 }
 0x36e   :  { %v323_v37 = vmul.f32 -1.442695, %v238_v35 }
 0x370   :  { %377 = vpow2.f32 %v323_v37 }
 0x37a   :  { %v378_v38 = vpop.eup %377 }
 0x37b   :  { %v244_v39 = vadd.f32 1.0, %v378_v38 }
 0x37d   :  { %379 = vrcp.f32 %v244_v39 }
 0x387   :  { %v380_v40 = vpop.eup %379 }
 0x388   :  { %v247_v41 = vmul.f32 2.0, %v380_v40 }
 0x38a   :  { %v324_v42 = vadd.f32 -1.0, %v247_v41 }
 0x38c   :  { %250 = vrot.lane.b32.xlu1 %v324_v42, %s463_s26 }
 0x3fe   :  { %v251_v43 = vpop.permute.xlu1 %250 }
 0x3ff   :  { %v253_v44 = vmul.f32 %v380_v40, %v251_v43 }
 0x401   :  { %381 = vtanh.f32 %v253_v44 }
 0x40b   :  { %v382_v45 = vpop.eup %381 }
 0x40c   :  { %256 = vrot.lane.b32.xlu0 %v382_v45, %s464_s3 }
 0x47e   :  { %v257_v46 = vpop.permute.xlu0 %256 }
 0x47f   :  { %v259_v47 = vmul.f32 %v380_v40, %v257_v46 }
 0x481   :  { %261 = vrot.lane.b32.xlu1 %v259_v47, %s464_s3  ;;  %v267_v48 = vmul.f32 %v259_v47, %v259_v47 }
 0x483   :  { %269 = vrot.lane.b32.xlu0 %v267_v48, %s464_s3 }
 0x4f3   :  { %v262_v49 = vpop.permute.xlu1 %261 }
 0x4f4   :  { %v264_v50 = vsel %vm168_vm2, %v262_v49, 0.0 }
 0x4f5   :  { %265 = vadd.xlane.f32.xlu1 %v264_v50  ;;  %v270_v51 = vpop.permute.xlu0 %269 }
 0x4f6   :  { %v272_v52 = vsel %vm168_vm2, %v270_v51, 0.0 }
 0x4f7   :  { %273 = vadd.xlane.f32.xlu0 %v272_v52 }
 0x506   :  { %293 = vrot.lane.b32.xlu1 %v287_v54, %s465_s27 }
 0x50d   :  { %289 = vrot.lane.b32.xlu0 %v287_v54, %s464_s3 }
 0x582   :  { %v266_v55 = vpop.xlane.xlu1 %265 }
 0x583   :  { %v275_v56 = vmul.f32 0.03125, %v266_v55 }
 0x584   :  { %v274_v57 = vpop.xlane.xlu0 %273 }
 0x585   :  { %v277_v58 = vmul.f32 %v275_v56, %v275_v56  ;;  %v276_v59 = vmul.f32 0.03125, %v274_v57  ;;  %v280_v63 = vsub.f32 %v259_v47, %v275_v56 }
 0x586   :  { %v294_v3 = vpop.permute.xlu1 %293 }
 0x587   :  { %v278_v60 = vsub.f32 %v276_v59, %v277_v58 }
 0x588   :  { %v290_v1 = vpop.permute.xlu0 %289 }
 0x589   :  { %v279_v61 = vmax.f32 %v278_v60, 0.0 }
 0x58b   :  { %v281_v62 = vadd.f32 1e-05, %v279_v61 }
 0x58d   :  { %383 = vrsqrt.f32 %v281_v62 }
 0x597   :  { %v384_v0 = vpop.eup %383 }
 0x598   :  { %v283_v2 = vmul.f32 %v384_v0, %v280_v63 }
 0x59a   :  { %v292_v4 = vmul.f32 %v290_v1, %v283_v2 }
 0x59c   :  { %v296_v5 = vadd.f32 %v294_v3, %v292_v4 }
 0x59e   :  { %v297_v6 = vmax.f32 %v296_v5, 0.0 }
 0x5a0   :  { %v298_v8 = vmul.f32 %v297_v6, %v287_v54 }
 0x5a2   :  { %300 = vrot.lane.b32.xlu1 %v298_v8, %s464_s3 }
 0x614   :  { %v301_v10 = vpop.permute.xlu1 %300 }
 0x615   :  { %v303_v11 = vsel %vm168_vm2, %v301_v10, 0.0 }
 0x616   :  { %304 = vadd.xlane.f32.xlu0 %v303_v11 }
 0x6a3   :  { %v305_v14 = vpop.xlane.xlu0 %304 }
 0x6a4   :  { %v310_v15 = vadd.f32 %v309_v13, %v305_v14 }
 0x6a6   :  { %312 = vst.msk [vmem:[%s568_s4] sm:$0xff] %vm311_vm3, %v310_v15 }
 0x6a7   :  { %317 = vsyncpa [#allocation3], 1 }
 0x6a8   :  { %318 = vsyncpa [#allocation5], 1 }

</bundles_post_ra>
